<compile_context>
chip_gen: v7x
topology: tpu7x:2x2x1
jax: 0.10.0
libtpu: 0.0.40
codegen_flags: <defaults>
</compile_context>

<pallas_src>
import functools

import jax
import jax.numpy as jnp
import numpy as np
from jax.experimental import pallas as pl
from jax.experimental.pallas import tpu as pltpu


def _round_up(x, m):
    return ((x + m - 1) // m) * m


def _clamp_tile(tile, n, *, align=32, keep_two_steps=True):
    """Clamp a requested tile to the (aligned) problem size.

    `keep_two_steps` keeps >=2 grid steps along the axis when possible so a 'parallel'
    grid axis can be sharded across both TensorCores on v7x. Alignment 32 keeps int8 /
    bf16 / f32 sublane tiling happy for every operand.
    """
    n_al = _round_up(max(int(n), 1), align)
    cap = n_al
    if keep_two_steps and n_al >= 2 * align:
        cap = _round_up(n_al // 2, align)
    return max(align, min(_round_up(int(tile), align), cap))


# --------------------------- Pallas kernels ---------------------------

def _face_stage_kernel(xc_ref, wf_ref, bf_ref, wp_ref, y_ref, *, crp):
    """Per-face hot path: PerItemConv3d + per-face part of F2VConv3d (incl. pointwise Wp).

    One fused bf16 matmul produces both the (depth-replicated) MLP0 pre-activation and the
    SH-mixed depthwise filters:
        z[:, :crp] = x @ W0_rep          z[:, crp:] = filt_coeff @ Wd_dense
    then
        h_rep = relu(z[:, :crp] + b0_rep)            == tile(relu(BN(x@W0+b0)), r)
        fw    = z[:, crp:] * h_rep                    (depthwise multiply, densely packed)
        y     = fw @ Wp_dense                         (pointwise proj., BN folded, K=crp)
    """
    z = jnp.dot(xc_ref[...], wf_ref[...], preferred_element_type=jnp.float32) + bf_ref[...]
    h_rep = jnp.maximum(z[:, :crp], 0.0)               # ReLU (BN pre-folded), depth-replicated
    filt = z[:, crp:]                                   # SH-mixed depthwise filters
    fw = (filt * h_rep).astype(jnp.bfloat16)            # depthwise multiply -> bf16 for MXU
    y_ref[...] = jnp.dot(fw, wp_ref[...],
                         preferred_element_type=jnp.float32).astype(y_ref.dtype)


def _vertex_stage_kernel(s_ref, y_ref, scale_ref, bp_ref, o_ref, acc_ref):
    """Per-vertex hot path: facet->vertex aggregation (face axis tiled as a reduction).

    acc += S_tile @ y_face_tile      (int8 incidence -> bf16 on the MXU, f32 accumulation)
    out  = relu(acc * (1/nf_count) + bp)   at the last face tile (scale/bias in f32 epilogue)
    """
    @pl.when(pl.program_id(1) == 0)
    def _():
        acc_ref[...] = jnp.zeros_like(acc_ref)

    s_tile = s_ref[...].astype(jnp.bfloat16)            # 0/1/2/3 exact in bf16
    acc_ref[...] += jnp.dot(s_tile, y_ref[...], preferred_element_type=jnp.float32)

    @pl.when(pl.program_id(1) == pl.num_programs(1) - 1)
    def _():
        o_ref[...] = jnp.maximum(acc_ref[...] * scale_ref[...] + bp_ref[...],
                                 0.0).astype(o_ref.dtype)


# --------------------------- Module wrapper ---------------------------

class FirstBlockPallas:
    """JAX/Pallas re-implementation of picasso pi2 FirstBlock (inference)."""

    def __init__(self, in_channels, out_channels, spharm_L, depth_multiplier=2, *, key):
        self.cin = in_channels
        self.cout = out_channels
        self.r = depth_multiplier
        self.ksz = (spharm_L + 1) ** 2          # number of real SH basis functions, l=0..L
        eps = 1e-5

        ks = jax.random.split(key, 13)

        def nrm(k, shape, scale=0.1):
            return (jax.random.normal(k, shape) * scale).astype(jnp.float32)

        # ---- raw parameters (kept for reference / training-time semantics) ----
        self.W0 = nrm(ks[0], (in_channels, out_channels))
        self.b0 = nrm(ks[1], (1, out_channels))
        g0 = 1.0 + nrm(ks[2], (1, out_channels))
        be0 = nrm(ks[3], (1, out_channels))
        m0 = nrm(ks[4], (1, out_channels))
        v0 = 1.0 + jnp.abs(nrm(ks[5], (1, out_channels)))
        self.s0 = (g0 / jnp.sqrt(v0 + eps)).astype(jnp.float32)
        self.t0 = (be0 - m0 * self.s0).astype(jnp.float32)

        self.Wd = nrm(ks[6], (self.ksz, out_channels * self.r))    # depthwise filter weights
        self.Wp = nrm(ks[7], (out_channels * self.r, out_channels))
        self.bp = nrm(ks[8], (1, out_channels))
        g1 = 1.0 + nrm(ks[9], (1, out_channels))
        be1 = nrm(ks[10], (1, out_channels))
        m1 = nrm(ks[11], (1, out_channels))
        v1 = 1.0 + jnp.abs(nrm(ks[12], (1, out_channels)))
        self.s1 = (g1 / jnp.sqrt(v1 + eps)).astype(jnp.float32)
        self.t1 = (be1 - m1 * self.s1).astype(jnp.float32)

        # ---- folded + densely packed, lane-padded, bf16 kernel parameters ----
        cin, cout, r, ksz = in_channels, out_channels, self.r, self.ksz
        cout_p = _round_up(cout, 128)           # lane-dense output channel width
        crp = _round_up(cout * r, 128)          # densely packed depth-multiplied width
        kin_p = _round_up(cin + ksz, 128)       # fused [x | filt_coeff] lane width
        self._cout_p, self._crp, self._kin_p = cout_p, crp, kin_p

        W0f = self.W0 * self.s0                 # fold BN0 into the linear layer
        b0f = self.b0 * self.s0 + self.t0
        Wpf = self.Wp * self.s1                 # fold BN1 into the pointwise projection
        bpf = self.bp * self.s1 + self.t1

        # Fused block-diagonal face-stage weight: [x | coeff] @ Wfused = [h_rep_pre | filt].
        # Column-replicating W0f/b0f r times yields tile(h, r) directly from one matmul.
        Wfused = jnp.zeros((kin_p, 2 * crp), jnp.float32)
        bfused = jnp.zeros((1, 2 * crp), jnp.float32)
        for m in range(r):
            Wfused = Wfused.at[:cin, m * cout:(m + 1) * cout].set(W0f)
            bfused = bfused.at[:, m * cout:(m + 1) * cout].set(b0f)
        Wfused = Wfused.at[cin:cin + ksz, crp:crp + cout * r].set(self.Wd)
        self._Wfused = Wfused.astype(jnp.bfloat16)
        self._bfused = bfused                                    # f32, added post-matmul

        Wp_dense = jnp.zeros((crp, cout_p), jnp.float32).at[:cout * r, :cout].set(Wpf)
        self._Wp_dense = Wp_dense.astype(jnp.bfloat16)
        self._bpp = jnp.zeros((1, cout_p), jnp.float32).at[:, :cout].set(bpf)

    # ---- padded tiling geometry (shared by __call__ and precompute_aggregation) ----
    def _geometry(self, nf, nv_out, tile_f, tile_v):
        tile_f = _clamp_tile(tile_f, nf)
        nf_p = _round_up(max(nf, 1), tile_f)
        tile_v = _clamp_tile(tile_v, nv_out)
        nv_p = _round_up(max(nv_out, 1), tile_v)
        return tile_f, nf_p, tile_v, nv_p

    # glue: factored face->vertex aggregation  A = S * diag(1/nf_count).
    # S is an int8 incidence-count matrix (exact), the per-vertex 1/nf_count scale stays in
    # f32 and is applied in the kernel epilogue. Build ONCE per mesh and reuse.
    # NOTE: assumes full_vt_map is injective on its valid (>=0) entries, which is how the
    #       original vertex-compaction map is used.
    def precompute_aggregation(self, face, full_nf_count, full_vt_map, *,
                               tile_f=1024, tile_v=1024):
        nf = face.shape[0]
        nv = full_nf_count.shape[0]
        nv_out = nv                             # first block: output vertex set == full set
        _, nf_p, _, nv_p = self._geometry(nf, nv_out, tile_f, tile_v)

        corners = face.reshape(-1)                                    # [Nf*3]
        fidx = jnp.repeat(jnp.arange(nf, dtype=jnp.int32), 3)         # [Nf*3]
        S = jnp.zeros((nv, nf_p), jnp.int32).at[corners, fidx].add(1)  # incidence counts (<=3)
        inv_cnt = 1.0 / jnp.maximum(full_nf_count.astype(jnp.float32), 1.0)

        valid = full_vt_map >= 0
        rows = jnp.where(valid, full_vt_map, 0)
        S_out = jnp.zeros((nv_p, nf_p), jnp.int32).at[rows].add(
            jnp.where(valid[:, None], S, 0))
        scale = jnp.zeros((nv_p,), jnp.float32).at[rows].add(
            jnp.where(valid, inv_cnt, 0.0))
        return S_out.astype(jnp.int8), scale[:, None]

    def __call__(self, inputs, face, full_nf_count, full_vt_map, filt_coeff,
                 agg=None, tile_f=1024, tile_v=1024):
        nf = inputs.shape[0]
        nv_out = full_nf_count.shape[0]         # first block: output vertex set == full set
        cin, cout, ksz = self.cin, self.cout, self.ksz
        cout_p, crp, kin_p = self._cout_p, self._crp, self._kin_p

        tile_f, nf_p, tile_v, nv_p = self._geometry(nf, nv_out, tile_f, tile_v)
        tile_fk = tile_f                        # face-axis reduction tile in the vertex stage

        # fused, lane-dense, bf16 face input [x | filt_coeff]; zero-padded face rows stay
        # inert (filt_coeff padding == 0 -> fw == 0 -> y_face == 0), and the padded columns
        # of S are all-zero as a second, independent guard.
        x_cat = jnp.zeros((nf_p, kin_p), jnp.bfloat16)
        x_cat = x_cat.at[:nf, :cin].set(inputs.astype(jnp.bfloat16))
        x_cat = x_cat.at[:nf, cin:cin + ksz].set(filt_coeff.astype(jnp.bfloat16))

        # ---- stage 1: per-face kernel (MLP0 + SH-depthwise + pointwise Wp of F2V0) ----
        y_face = pl.pallas_call(
            functools.partial(_face_stage_kernel, crp=crp),
            out_shape=jax.ShapeDtypeStruct((nf_p, cout_p), jnp.bfloat16),
            grid=(nf_p // tile_f,),
            in_specs=[
                pl.BlockSpec((tile_f, kin_p), lambda i: (i, 0)),         # [x | coeff] (bf16)
                pl.BlockSpec((kin_p, 2 * crp), lambda i: (0, 0)),        # fused W0_rep/Wd (bf16)
                pl.BlockSpec((1, 2 * crp), lambda i: (0, 0)),            # fused bias (f32)
                pl.BlockSpec((crp, cout_p), lambda i: (0, 0)),           # Wp dense (bf16)
            ],
            out_specs=pl.BlockSpec((tile_f, cout_p), lambda i: (i, 0)),
            compiler_params=pltpu.CompilerParams(dimension_semantics=("parallel",)),
        )(x_cat, self._Wfused, self._bfused, self._Wp_dense)

        # ---- glue: factored aggregation (cached per mesh when passed in) ----
        if agg is None:
            agg = self.precompute_aggregation(face, full_nf_count, full_vt_map,
                                              tile_f=tile_f, tile_v=tile_v)
        S, scale = agg
        assert S.shape == (nv_p, nf_p) and S.dtype == jnp.int8
        assert scale.shape == (nv_p, 1)

        # ---- stage 2: per-vertex kernel (aggregation over tiled face axis + scale/bias/ReLU) ----
        out_p = pl.pallas_call(
            _vertex_stage_kernel,
            out_shape=jax.ShapeDtypeStruct((nv_p, cout_p), jnp.bfloat16),
            grid=(nv_p // tile_v, nf_p // tile_fk),
            in_specs=[
                pl.BlockSpec((tile_v, tile_fk), lambda i, k: (i, k),     # S incidence (int8)
                             pipeline_mode=pl.Buffered(3)),
                pl.BlockSpec((tile_fk, cout_p), lambda i, k: (k, 0)),    # y_face (bf16)
                pl.BlockSpec((tile_v, 1), lambda i, k: (i, 0)),          # 1/nf_count (f32)
                pl.BlockSpec((1, cout_p), lambda i, k: (0, 0)),          # bp (BN folded, f32)
            ],
            out_specs=pl.BlockSpec((tile_v, cout_p), lambda i, k: (i, 0)),
            scratch_shapes=[pltpu.VMEM((tile_v, cout_p), jnp.float32)],  # f32 accumulator
            compiler_params=pltpu.CompilerParams(
                dimension_semantics=("parallel", "arbitrary")),
        )(S, y_face, scale, self._bpp)

        # TODO(synk): a fused multi-block pipeline should consume the padded bf16 buffer
        #             directly instead of cropping here.
        return out_p[:nv_out, :cout]


# --------------------------- demo / check ---------------------------

if __name__ == "__main__":
    NV, NF = 256, 512
    CIN, COUT, SPHARM_L, R = 8, 32, 3, 2
    KSZ = (SPHARM_L + 1) ** 2

    key = jax.random.PRNGKey(0)
    k_in, k_face, k_coeff, k_par = jax.random.split(key, 4)

    block = FirstBlockPallas(CIN, COUT, SPHARM_L, depth_multiplier=R, key=k_par)

    # synthetic mesh batch: face features, face->vertex connectivity, per-vertex face counts
    x = jax.random.normal(k_in, (NF, CIN), dtype=jnp.float32)
    face = jax.random.randint(k_face, (NF, 3), 0, NV, dtype=jnp.int32)
    nf_count = jnp.zeros((NV,), jnp.int32).at[face.reshape(-1)].add(1)
    vt_map = jnp.arange(NV, dtype=jnp.int32)                  # identity map (no filtered vertices)
    filt_coeff = jax.random.normal(k_coeff, (NF, KSZ), dtype=jnp.float32) * 0.5

    # build the factored aggregation (int8 incidence + f32 per-vertex scale) once per mesh
    agg = block.precompute_aggregation(face, nf_count, vt_map)

    out = block(x, face, nf_count, vt_map, filt_coeff, agg=agg)
    out = jax.block_until_ready(out)
    assert out.shape == (NV, COUT)

    # independent pure-JAX reference (f32, unfolded BN, scatter-based aggregation)
    h = jnp.maximum((x @ block.W0 + block.b0) * block.s0 + block.t0, 0.0)
    filt = filt_coeff @ block.Wd
    fw_ref = filt * jnp.tile(h, (1, R))
    fidx = jnp.repeat(jnp.arange(NF), 3)
    corners = face.reshape(-1)
    contrib = fw_ref[fidx] / jnp.maximum(nf_count, 1).astype(jnp.float32)[corners][:, None]
    agg_ref = jnp.zeros((NV, COUT * R), jnp.float32).at[corners].add(contrib)
    agg_ref = jnp.zeros((NV, COUT * R), jnp.float32).at[vt_map].add(agg_ref)
    ref = jnp.maximum((agg_ref @ block.Wp + block.bp) * block.s1 + block.t1, 0.0)

    np.testing.assert_allclose(np.asarray(out.astype(jnp.float32)), np.asarray(ref),
                               rtol=2e-2, atol=2e-2)
    print("KERNEL_OK")
</pallas_src>

<mosaic_0001>
module attributes {stable_mosaic.version = 11 : i64} {
  func.func @_face_stage_kernel(%arg0: i32, %arg1: memref<256x128xbf16, #tpu.memory_space<vmem>>, %arg2: memref<128x256xbf16, #tpu.memory_space<vmem>>, %arg3: memref<1x256xf32, #tpu.memory_space<vmem>>, %arg4: memref<128x128xbf16, #tpu.memory_space<vmem>>, %arg5: memref<256x128xbf16, #tpu.memory_space<vmem>>) attributes {dimension_semantics = [#tpu.dimension_semantics<parallel>], iteration_bounds = array<i64: 2>, scalar_prefetch = 0 : i64, scratch_operands = 0 : i64, tpu.core_type = #tpu.core_type<tc>, window_params = [{transform_indices = @transform_0, window_bounds = array<i64: 256, 128>}, {pipeline_mode = #tpu.pipeline_mode<synchronous>, transform_indices = @transform_1, window_bounds = array<i64: 128, 256>}, {pipeline_mode = #tpu.pipeline_mode<synchronous>, transform_indices = @transform_2, window_bounds = array<i64: 1, 256>}, {pipeline_mode = #tpu.pipeline_mode<synchronous>, transform_indices = @transform_3, window_bounds = array<i64: 128, 128>}, {transform_indices = @transform_4, window_bounds = array<i64: 256, 128>}]} {
    %c0 = arith.constant 0 : index
    %c0_0 = arith.constant 0 : index
    %0 = vector.load %arg1[%c0, %c0_0] : memref<256x128xbf16, #tpu.memory_space<vmem>>, vector<256x128xbf16>
    %c0_1 = arith.constant 0 : index
    %c0_2 = arith.constant 0 : index
    %1 = vector.load %arg2[%c0_1, %c0_2] : memref<128x256xbf16, #tpu.memory_space<vmem>>, vector<128x256xbf16>
    %cst = arith.constant dense<0.000000e+00> : vector<256x256xf32>
    %2 = tpu.matmul %0, %1, %cst {dimension_numbers = #tpu.dot_dimension_numbers<[1], [0], [0], [1], [0, 0, 1, 1], [], []>} : vector<256x128xbf16>, vector<128x256xbf16>, vector<256x256xf32> -> vector<256x256xf32>
    %c0_3 = arith.constant 0 : index
    %c0_4 = arith.constant 0 : index
    %3 = vector.load %arg3[%c0_3, %c0_4] : memref<1x256xf32, #tpu.memory_space<vmem>>, vector<1x256xf32>
    %4 = vector.broadcast %3 : vector<1x256xf32> to vector<256x256xf32>
    %5 = arith.addf %2, %4 : vector<256x256xf32>
    %6 = vector.extract_strided_slice %5 {offsets = [0, 0], sizes = [256, 128], strides = [1, 1]} : vector<256x256xf32> to vector<256x128xf32>
    %cst_5 = arith.constant 0.000000e+00 : f32
    %7 = vector.broadcast %cst_5 : f32 to vector<256x128xf32>
    %8 = arith.maximumf %6, %7 : vector<256x128xf32>
    %9 = vector.extract_strided_slice %5 {offsets = [0, 128], sizes = [256, 128], strides = [1, 1]} : vector<256x256xf32> to vector<256x128xf32>
    %10 = arith.mulf %9, %8 : vector<256x128xf32>
    %11 = arith.truncf %10 : vector<256x128xf32> to vector<256x128xbf16>
    %c0_6 = arith.constant 0 : index
    %c0_7 = arith.constant 0 : index
    %12 = vector.load %arg4[%c0_6, %c0_7] : memref<128x128xbf16, #tpu.memory_space<vmem>>, vector<128x128xbf16>
    %cst_8 = arith.constant dense<0.000000e+00> : vector<256x128xf32>
    %13 = tpu.matmul %11, %12, %cst_8 {dimension_numbers = #tpu.dot_dimension_numbers<[1], [0], [0], [1], [0, 0, 1, 1], [], []>} : vector<256x128xbf16>, vector<128x128xbf16>, vector<256x128xf32> -> vector<256x128xf32>
    %14 = arith.truncf %13 : vector<256x128xf32> to vector<256x128xbf16>
    %c0_9 = arith.constant 0 : index
    %c0_10 = arith.constant 0 : index
    %15 = vector.load %arg5[%c0_9, %c0_10] : memref<256x128xbf16, #tpu.memory_space<vmem>>, vector<256x128xbf16>
    tpu.vector_store %arg5[%c0_9, %c0_10], %14 {strides = array<i32>} : memref<256x128xbf16, #tpu.memory_space<vmem>>, vector<256x128xbf16>,
    return
  }
  func.func @transform_0(%arg0: i32) -> (i32, i32) {
    %c0_i32 = arith.constant 0 : i32
    %c0_i32_0 = arith.constant 0 : i32
    return %arg0, %c0_i32 : i32, i32
  }
  func.func @transform_1(%arg0: i32) -> (i32, i32) {
    %c0_i32 = arith.constant 0 : i32
    %c0_i32_0 = arith.constant 0 : i32
    %c0_i32_1 = arith.constant 0 : i32
    return %c0_i32, %c0_i32_0 : i32, i32
  }
  func.func @transform_2(%arg0: i32) -> (i32, i32) {
    %c0_i32 = arith.constant 0 : i32
    %c0_i32_0 = arith.constant 0 : i32
    %c0_i32_1 = arith.constant 0 : i32
    return %c0_i32, %c0_i32_0 : i32, i32
  }
  func.func @transform_3(%arg0: i32) -> (i32, i32) {
    %c0_i32 = arith.constant 0 : i32
    %c0_i32_0 = arith.constant 0 : i32
    %c0_i32_1 = arith.constant 0 : i32
    return %c0_i32, %c0_i32_0 : i32, i32
  }
  func.func @transform_4(%arg0: i32) -> (i32, i32) {
    %c0_i32 = arith.constant 0 : i32
    %c0_i32_0 = arith.constant 0 : i32
    return %arg0, %c0_i32 : i32, i32
  }
}

</mosaic_0001>

<bundles_post_ra>
// kernel: tpu_custom_call.1
= control target key start
LH: loop header
LB: loop body
LE: loop exit
PB: predicated region body
PF: predicated region fallthrough
CT: control target
= control target key end

     0   :  { %9 = vsyncpa [#allocation3], 0  ;;  %s2275_s0 = inlined_call_operand.hbm [shape: bf16[512,128], index: 0, kind: input, shape index: {}]   ;;  %s2276_s1 = inlined_call_operand.hbm [shape: bf16[128,256], index: 1, kind: input, shape index: {}]   ;;  %s2277_s2 = inlined_call_operand.vmem [shape: f32[1,256], index: 2, kind: input, shape index: {}]   ;;  %s2278_s3 = inlined_call_operand.hbm [shape: bf16[128,128], index: 3, kind: input, shape index: {}]   ;;  %s2279_s4 = inlined_call_operand.hbm [shape: bf16[512,128], index: 4, kind: output, shape index: {}]  }
   0x1   :  { %11 = vsyncpa [#allocation3 + $0x1], 0 }
   0x2   :  { %12 = vsyncpa [#allocation6], 0 }
   0x3   :  { %13 = vsyncpa [#allocation4], 0 }
   0x4   :  { %15 = vsyncpa [#allocation4 + $0x1], 0  ;;  %s1871_s15 = smov 0   ;;  %s1873_s16 = smov 0  }
   0x5   :  { %s1875_s17 = smov 0   ;;  %s1877_s18 = smov 0  }
   0x6 LB: > { %s1892_s19 = sadd.s32 4294967295, %s1833_s18   ;;  %s1248_s20 = sadd.s32 4294967294, %s1833_s18   ;;  %s1833_s18 = sphi %s1877_s18, %s2299_s18   ;;  %s1829_s17 = sphi %s1875_s17, %s2298_s17   ;;  %s1825_s16 = sphi %s1873_s16, %s2297_s16   ;;  %s1821_s15 = sphi %s1871_s15, %s2296_s15  }
   0x7   : > { %p41_p0 = scmp.ne.s32.totalorder %s1825_s16, %s1821_s15  ;;  %p2280_p1 = scmp.eq.s32.totalorder %s1892_s19, 0 }
   0x8   : > { %p134_p3 = scmp.eq.s32.totalorder %s1248_s20, 1  ;;  %p1249_p5 = scmp.ge.s32.totalorder %s1833_s18, 1 }
   0x9   : > { %p1901_p4 = por %p2280_p1, %p41_p0  ;;  %p141_p7 = scmp.lt.s32.totalorder %s1833_s18, 3 }
   0xa   : > { %p1906_p6 = por %p134_p3, %p41_p0  ;;  %s1835_s24 = smov [#allocation5]  }
   0xb   : > { %s2283_s21 = scalar_select %p1901_p4, 1, 0 }
   0xc   : > { %s2284_s22 = scalar_select %p1906_p6, 1, 0 }
   0xd   : > { %p1911_p8 = pnand %p1249_p5, %p141_p7  ;;  %s153_s25 = sshll.u32 %s1835_s24, 4  ;;  %s1915_s25 = int_to_ptr.vmem [resolvable:$true] %s153_s25 }
   0xe   : > { %s1836_s27 = smov [#allocation7]   ;;  %s1677_s5 = scalar_lea.hbm %s2276_s1, 2048 }
   0xf   : > { %p1567_p9 = pneg %p1911_p8  ;;  %s169_s28 = sshll.u32 %s1836_s27, 4  ;;  %s1926_s28 = int_to_ptr.vmem [resolvable:$true] %s169_s28 }
  0x10   : > { %p1678_p12 = scmp.ne.s32.totalorder %s2276_s1, %s1677_s5  ;;  %p1684_p5 = scmp.lt.u32.totalorder %s1677_s5, %s2276_s1 }
  0x11   : > { %p1922_p11 = pnand %p1567_p9, %p2280_p1 }
  0x13   : > { %p1679_p13 = pneg %p1922_p11 }
  0x15   : > { %p1680_p0 = pnand %p1679_p13, %p1678_p12 }
  0x17   : > { %p1681_p3 = pneg %p1680_p0 }
  0x19   : > { %p1686_p7 = pnand %p1684_p5, %p1681_p3 }
  0x1b   : > { %1689 = shalt.err (!%p1686_p7)
}
  0x1c   : > { %s1690_s10 = scalar_lea.vmem %s1915_s25, 2048  ;;  %p1698_p2 = scmp.lt.s32.totalorder %s1915_s25, %s1915_s25 }
  0x1d   : > { %p1691_p9 = scmp.ne.s32.totalorder %s1915_s25, %s1690_s10  ;;  %p1699_p12 = scmp.lt.s32.totalorder %s1690_s10, %s1690_s10 }
  0x1f   : > { %p1693_p10 = pnand %p1691_p9, %p1679_p13  ;;  %p1700_p0 = por %p1699_p12, %p1698_p2 }
  0x21   : > { %p1694_p1 = pneg %p1693_p10 }
  0x23   : > { %p1701_p6 = pnand %p1700_p0, %p1694_p1 }
  0x25   : > { %1704 = shalt.err (!%p1701_p6)
}
  0x26   : > { %s1837_s11 = smov 128   ;;  %s1838_s12 = smov 8  }
  0x27   : > { %1570 = dma.hbm_to_vmem [thread:$0]  (!%p1922_p11), %s2276_s1, 2048, %s1915_s25, [#allocation6], %s1837_s11, %s1837_s11, %s1838_s12  }
  0x28   : > { %s1705_s27 = scalar_lea.hbm %s2278_s3, 1024 }
  0x29   : > { %p1706_p2 = scmp.ne.s32.totalorder %s2278_s3, %s1705_s27  ;;  %p1712_p10 = scmp.lt.u32.totalorder %s1705_s27, %s2278_s3 }
  0x2b   : > { %p1708_p1 = pnand %p1706_p2, %p1679_p13 }
  0x2d   : > { %p1709_p6 = pneg %p1708_p1 }
  0x2f   : > { %p1714_p3 = pnand %p1712_p10, %p1709_p6 }
  0x31   : > { %1717 = shalt.err (!%p1714_p3)
}
  0x32   : > { %s1718_s25 = scalar_lea.vmem %s1926_s28, 1024  ;;  %p1726_p12 = scmp.lt.s32.totalorder %s1926_s28, %s1926_s28 }
  0x33   : > { %p1719_p5 = scmp.ne.s32.totalorder %s1926_s28, %s1718_s25  ;;  %p1727_p0 = scmp.lt.s32.totalorder %s1718_s25, %s1718_s25 }
  0x35   : > { %p1721_p7 = pnand %p1719_p5, %p1679_p13  ;;  %p1728_p2 = por %p1727_p0, %p1726_p12 }
  0x37   : > { %p1722_p9 = pneg %p1721_p7 }
  0x39   : > { %p1729_p1 = pnand %p1728_p2, %p1722_p9 }
  0x3b   : > { %1732 = shalt.err (!%p1729_p1)
}
  0x3c   : > { %s1839_s7 = smov 64   ;;  %s1840_s8 = smov 4  }
  0x3d   : > { %1573 = dma.hbm_to_vmem [thread:$0]  (!%p1922_p11), %s2278_s3, 1024, %s1926_s28, [#allocation6], %s1839_s7, %s1839_s7, %s1840_s8  }
  0x3e   : > { %s1984_s11 = sadd.s32 1, %s1833_s18   ;;  %s28_s13 = sadd.s32 1, %s1829_s17 }
  0x3f   : > { %s25_s12 = ssub.s32 %s1833_s18, %s1984_s11  ;;  %p35_p6 = scmp.ne.s32.totalorder %s1829_s17, %s1825_s16 }
  0x40   : > { %p26_p13 = scmp.eq.s32.totalorder %s25_s12, 0  ;;  %p36_p10 = scmp.eq.s32.totalorder %s1833_s18, 0 }
  0x41   : > { %p2287_p5 = scmp.eq.s32.totalorder %s1892_s19, 1  ;;  %p1584_p9 = scmp.lt.s32.totalorder %s1833_s18, 2 }
  0x42   : > { %s1993_s14 = scalar_select %p26_p13, %s1829_s17, %s28_s13  }
  0x43   : > { %p37_p3 = por %p36_p10, %p35_p6  ;;  %p1997_p7 = por %p2287_p5, %p35_p6 }
  0x44   : > { %s183_s20 = sand.u32 1, %s1829_s17   ;;  %s1338_s28 = sshll.u32 %s1833_s18, 11 }
  0x45   : > { %s2288_s26 = scalar_select %p1997_p7, 1, 0 }
  0x46   : > { %s1253_s24 = sshll.u32 %s183_s20, 7  ;;  %s2007_s30 = scalar_lea.hbm %s2275_s0, %s1338_s28 }
  0x47   : > { %s187_s5 = scalar_lea.vmem [#allocation2], %s1253_s24  ;;  %p2011_p11 = pnand %p1584_p9, %p37_p3 }
  0x48   : > { %s194_s6 = sshll.u32 %s187_s5, 4  ;;  %s2015_s9 = scalar_lea.sflag [#allocation3], %s183_s20  ;;  %s2009_s6 = int_to_ptr.vmem [resolvable:$true] %s194_s6 }
  0x49   : > { %s1733_s10 = scalar_lea.hbm %s2007_s30, 2048  ;;  %p1735_p0 = pneg %p2011_p11 }
  0x4a   : > { %p1734_p12 = scmp.ne.s32.totalorder %s2007_s30, %s1733_s10  ;;  %s1738_s24 = scalar_lea.hbm %s2275_s0, 4096 }
  0x4b   : > { %p1739_p13 = scmp.lt.u32.totalorder %s2007_s30, %s2275_s0  ;;  %p1740_p6 = scmp.lt.u32.totalorder %s1738_s24, %s1733_s10 }
  0x4c   : > { %p1736_p2 = pnand %p1735_p0, %p1734_p12  ;;  %p1742_p3 = scmp.lt.u32.totalorder %s1733_s10, %s2007_s30 }
  0x4d   : > { %p1741_p10 = por %p1740_p6, %p1739_p13 }
  0x4e   : > { %p1737_p1 = pneg %p1736_p2 }
  0x4f   : > { %p1743_p5 = por %p1742_p3, %p1741_p10 }
  0x51   : > { %p1744_p9 = pnand %p1743_p5, %p1737_p1 }
  0x53   : > { %1747 = shalt.err (!%p1744_p9)
}
  0x54   : > { %s1748_s20 = scalar_lea.vmem %s2009_s6, 2048  ;;  %s1841_s29 = smov [#allocation2]  }
  0x55   : > { %p1749_p12 = scmp.ne.s32.totalorder %s2009_s6, %s1748_s20  ;;  %s1753_s5 = sshll.u32 %s1841_s29, 4  ;;  %s1754_s5 = int_to_ptr.vmem [resolvable:$false] %s1753_s5 }
  0x56   : > { %s1755_s12 = scalar_lea.vmem %s1754_s5, 4096  ;;  %p1756_p4 = scmp.lt.s32.totalorder %s2009_s6, %s1754_s5 }
  0x57   : > { %p1751_p2 = pnand %p1749_p12, %p1735_p0  ;;  %p1757_p13 = scmp.lt.s32.totalorder %s1755_s12, %s1748_s20 }
  0x59   : > { %p1752_p7 = pneg %p1751_p2  ;;  %p1758_p6 = por %p1757_p13, %p1756_p4 }
  0x5b   : > { %p1759_p10 = pnand %p1758_p6, %p1752_p7 }
  0x5d   : > { %1762 = shalt.err (!%p1759_p10)
}
  0x5e   : > { %1577 = dma.hbm_to_vmem [thread:$0]  (!%p2011_p11), %s2007_s30, 2048, %s2009_s6, %s2015_s9, %s1839_s7, %s1839_s7, %s1840_s8  }
  0x5f   : > { %206 = sbr.rel (%p1911_p8) target bundleno = 698 (0x2ba), region = 36  ;;  %s2049_s10 = sand.u32 (!%p1911_p8), 1, %s1825_s16  }
  0x60   : > { %s1257_s13 = sshll.u32 (!%p1911_p8), %s2049_s10, 7  ;;  %s209_s24 = scalar_lea.sflag (!%p1911_p8), [#allocation3], %s2049_s10 }
  0x61   : > { %s2055_s25 = scalar_lea.vmem (!%p1911_p8), [#allocation2], %s1257_s13  ;;  %p2290_p4 = scmp.ne.s32.totalorder (!%p1911_p8), %s2283_s21, 0 }
  0x66   : > { %1808 = dma.done.wait (%p2290_p4), %s209_s24, 2048  }
  0x67   : > { %1810 = vsyncadd (%p2290_p4), %s209_s24, 4294965248  ;;  %p2291_p7 = scmp.eq.s32.totalorder %s1892_s19, 0 }
  0x69   : > { %1812 = dma.done.wait (%p2291_p7), [#allocation6], 3072   ;;  %p2292_p8 = pmov %p2291_p7 }
  0x6a   : > { %v1842_v0 = vmov 0   ;;  %v1629_v1 = vld [vmem:[#allocation5 + $0x4] ss:$8 sps:$4 sm:$0xff]   ;;  %v1631_v2 = vld [vmem:[#allocation5] ss:$8 sps:$4 sm:$0xff]   ;;  %v1671_v21 = vld [vmem:[#allocation7 + $0x10] sm:$0xff]   ;;  %v298_v41 = vlaneseq }
  0x6b   : > { %1814 = vsyncadd (%p2292_p8), [#allocation6], 4294964224  ;;  %516 = vmatprep.mubr.bf16.mxu0 %v1842_v0  ;;  %636 = vmatprep.mubr.bf16.mxu1 %v1842_v0  ;;  %v1632_v3 = vld [vmem:[#allocation5 + $0x14] ss:$8 sps:$4 sm:$0xff]   ;;  %v1634_v4 = vld [vmem:[#allocation5 + $0x10] ss:$8 sps:$4 sm:$0xff]  }
  0x6c   : > { %484 = vmatprep.subr.bf16.mxu0 %v1629_v1  ;;  %1539 = vmatprep.subr.bf16.mxu1 %v1629_v1  ;;  %v1635_v5 = vld [vmem:[#allocation5 + $0x24] ss:$8 sps:$4 sm:$0xff]   ;;  %v1637_v6 = vld [vmem:[#allocation5 + $0x20] ss:$8 sps:$4 sm:$0xff]   ;;  %v1638_v7 = vld [vmem:[#allocation5 + $0x34] ss:$8 sps:$4 sm:$0xff]  }
  0x6d   : > { %485 = vmatpush1.bf16.msra.mxu0 %v1631_v2  ;;  %1547 = vmatpush1.bf16.msra.mxu1 %v1631_v2  ;;  %v1640_v8 = vld [vmem:[#allocation5 + $0x30] ss:$8 sps:$4 sm:$0xff]   ;;  %v1641_v9 = vld [vmem:[#allocation5 + $0x44] ss:$8 sps:$4 sm:$0xff]   ;;  %v1643_v10 = vld [vmem:[#allocation5 + $0x40] ss:$8 sps:$4 sm:$0xff]  }
  0x6e   : > { %486 = vmatprep.subr.bf16.mxu0 %v1632_v3  ;;  %1540 = vmatprep.subr.bf16.mxu1 %v1632_v3  ;;  %v1644_v11 = vld [vmem:[#allocation5 + $0x54] ss:$8 sps:$4 sm:$0xff]   ;;  %v1646_v12 = vld [vmem:[#allocation5 + $0x50] ss:$8 sps:$4 sm:$0xff]   ;;  %v1647_v13 = vld [vmem:[#allocation5 + $0x64] ss:$8 sps:$4 sm:$0xff]  }
  0x6f   : > { %v1649_v14 = vld [vmem:[#allocation5 + $0x60] ss:$8 sps:$4 sm:$0xff]   ;;  %v1650_v15 = vld [vmem:[#allocation5 + $0x74] ss:$8 sps:$4 sm:$0xff]   ;;  %v1652_v16 = vld [vmem:[#allocation5 + $0x70] ss:$8 sps:$4 sm:$0xff]  }
  0x70   : > { %v1669_v17 = vld [vmem:[#allocation7] sm:$0xff]   ;;  %v1670_v20 = vld [vmem:[#allocation7 + $0x8] sm:$0xff]   ;;  %v1672_v24 = vld [vmem:[#allocation7 + $0x18] sm:$0xff]   ;;  %v299_v42 = vshrl.u32 %v298_v41, 7  ;;  %s2206_s7 = scalar_lea.vmem [#allocation8], %s1257_s13  ;;  %s1371_s8 = sshll.u32 %s1892_s19, 11 }
  0x71   : > { %487 = vmatpush1.bf16.msra.mxu0 %v1634_v4  ;;  %1548 = vmatpush1.bf16.msra.mxu1 %v1634_v4  ;;  %v1653_v18 = vld [vmem:[%s2055_s25] sm:$0xff]   ;;  %v1654_v22 = vld [vmem:[%s2055_s25 + $0x8] sm:$0xff]   ;;  %v1655_v25 = vld [vmem:[%s2055_s25 + $0x10] sm:$0xff]   ;;  %s1156_s30 = sshll.u32 %s2206_s7, 4  ;;  %s2227_s28 = scalar_lea.hbm %s2279_s4, %s1371_s8  ;;  %s2229_s30 = int_to_ptr.vmem [resolvable:$true] %s1156_s30 }
  0x72   : > { %488 = vmatprep.subr.bf16.mxu0 %v1635_v5  ;;  %1541 = vmatprep.subr.bf16.mxu1 %v1635_v5  ;;  %v1663_v19 = vld [vmem:[%s2055_s25 + $0x60] sm:$0xff]   ;;  %v1665_v23 = vld [vmem:[%s2055_s25 + $0x68] sm:$0xff]   ;;  %v1667_v26 = vld [vmem:[%s2055_s25 + $0x70] sm:$0xff]   ;;  %v300_v43 = vsub.s32 0, %v299_v42  ;;  %v304_v45 = vsub.s32 1, %v299_v42  ;;  %s1143_s27 = scalar_lea.sflag [#allocation4], %s2049_s10 }
  0x73   : > { %v1656_v27 = vld [vmem:[%s2055_s25 + $0x18] sm:$0xff]   ;;  %v1657_v29 = vld [vmem:[%s2055_s25 + $0x20] sm:$0xff]   ;;  %v1658_v30 = vld [vmem:[%s2055_s25 + $0x28] sm:$0xff]   ;;  %s1763_s19 = scalar_lea.vmem %s2229_s30, 2048  ;;  %p2293_p0 = scmp.ne.s32.totalorder %s2288_s26, 0 }
  0x74   : > { %v1668_v28 = vld [vmem:[%s2055_s25 + $0x78] sm:$0xff]   ;;  %v1659_v31 = vld [vmem:[%s2055_s25 + $0x30] sm:$0xff]   ;;  %v1661_v33 = vld [vmem:[%s2055_s25 + $0x40] sm:$0xff]   ;;  %p1764_p11 = scmp.ne.s32.totalorder %s2229_s30, %s1763_s19  ;;  %s1843_s20 = smov [#allocation8]  }
  0x75   : > { %489 = vmatpush1.bf16.msra.mxu0 %v1637_v6  ;;  %1549 = vmatpush1.bf16.msra.mxu1 %v1637_v6  ;;  %v1660_v32 = vld [vmem:[%s2055_s25 + $0x38] sm:$0xff]   ;;  %v1662_v34 = vld [vmem:[%s2055_s25 + $0x48] sm:$0xff]   ;;  %v1664_v35 = vld [vmem:[%s2055_s25 + $0x50] sm:$0xff]   ;;  %s1767_s29 = sshll.u32 %s1843_s20, 4  ;;  %s1768_s29 = int_to_ptr.vmem [resolvable:$false] %s1767_s29 }
  0x76   : > { %490 = vmatprep.subr.bf16.mxu0 %v1638_v7  ;;  %1542 = vmatprep.subr.bf16.mxu1 %v1638_v7  ;;  %v1666_v36 = vld [vmem:[%s2055_s25 + $0x58] sm:$0xff]   ;;  %v1673_v37 = vld [vmem:[#allocation7 + $0x20] sm:$0xff]   ;;  %v1674_v38 = vld [vmem:[#allocation7 + $0x28] sm:$0xff]   ;;  %p1765_p1 = pnand %p1764_p11, %p2293_p0  ;;  %s1769_s5 = scalar_lea.vmem %s1768_s29, 4096 }
  0x77   : > { %v1675_v39 = vld [vmem:[#allocation7 + $0x30] sm:$0xff]   ;;  %v1676_v40 = vld [vmem:[#allocation7 + $0x38] sm:$0xff]   ;;  %v296_v44 = vld [vmem:[%s2277_s2] sm:$0x3]  ;;  %p1770_p5 = scmp.lt.s32.totalorder %s2229_s30, %s1768_s29  ;;  %p1771_p9 = scmp.lt.s32.totalorder %s1769_s5, %s1763_s19 }
  0x78   : > { %v2100_v46 = vrot.slane %v296_v44, %v300_v43  ;;  %v2102_v47 = vrot.slane %v296_v44, %v304_v45  ;;  %p1766_p3 = pneg %p1765_p1 }
  0x79   : > { %491 = vmatpush1.bf16.msra.mxu0 %v1640_v8  ;;  %1550 = vmatpush1.bf16.msra.mxu1 %v1640_v8  ;;  %p1772_p12 = por %p1771_p9, %p1770_p5 }
  0x7a   : > { %492 = vmatprep.subr.bf16.mxu0 %v1641_v9  ;;  %1543 = vmatprep.subr.bf16.mxu1 %v1641_v9 }
  0x7b   : > { %p1773_p2 = pnand %p1772_p12, %p1766_p3 }
  0x7d   : > { %493 = vmatpush1.bf16.msra.mxu0 %v1643_v10  ;;  %1551 = vmatpush1.bf16.msra.mxu1 %v1643_v10 }
  0x7e   : > { %494 = vmatprep.subr.bf16.mxu0 %v1644_v11  ;;  %1544 = vmatprep.subr.bf16.mxu1 %v1644_v11 }
  0x81   : > { %495 = vmatpush1.bf16.msra.mxu0 %v1646_v12  ;;  %1552 = vmatpush1.bf16.msra.mxu1 %v1646_v12 }
  0x82   : > { %496 = vmatprep.subr.bf16.mxu0 %v1647_v13  ;;  %1545 = vmatprep.subr.bf16.mxu1 %v1647_v13 }
  0x85   : > { %497 = vmatpush1.bf16.msra.mxu0 %v1649_v14  ;;  %1553 = vmatpush1.bf16.msra.mxu1 %v1649_v14 }
  0x86   : > { %498 = vmatprep.subr.bf16.mxu0 %v1650_v15  ;;  %1546 = vmatprep.subr.bf16.mxu1 %v1650_v15 }
  0x89   : > { %499 = vmatpush1.bf16.msra.mxu0 %v1652_v16  ;;  %1554 = vmatpush1.bf16.msra.mxu1 %v1652_v16 }
  0x8a   : > { %1491 = vmatprep.subr.bf16.mxu1 %v1669_v17 }
  0x8c   : > { %517 = vmatmul.mubr.bf16.vlgmr.msra.gmra.mrb[0].mxu0 %v1653_v18  ;;  %637 = vmatmul.mubr.bf16.vlgmr.msra.gmra.mrb[0].mxu1 %v1663_v19 }
  0x8d   : > { %526 = vmatprep.mubr.bf16.mxu0 %v1842_v0  ;;  %646 = vmatprep.mubr.bf16.mxu1 %v1842_v0 }
  0x8e   : > { %1492 = vmatpush3.bf16.msra.mxu1 %v1669_v17 }
  0x8f   : > { %1493 = vmatprep.subr.bf16.mxu1 %v1670_v20 }
  0x92   : > { %1494 = vmatpush3.bf16.msra.mxu1 %v1670_v20 }
  0x93   : > { %1495 = vmatprep.subr.bf16.mxu1 %v1671_v21 }
  0x94   : > { %527 = vmatmul.mubr.bf16.gmra.mrb[4].mxu0 %v1654_v22  ;;  %647 = vmatmul.mubr.bf16.gmra.mrb[4].mxu1 %v1665_v23 }
  0x95   : > { %536 = vmatprep.mubr.bf16.mxu0 %v1842_v0  ;;  %656 = vmatprep.mubr.bf16.mxu1 %v1842_v0 }
  0x96   : > { %1496 = vmatpush3.bf16.msra.mxu1 %v1671_v21 }
  0x97   : > { %1497 = vmatprep.subr.bf16.mxu1 %v1672_v24 }
  0x9a   : > { %1498 = vmatpush3.bf16.msra.mxu1 %v1672_v24 }
  0x9b   : > { %1499 = vmatprep.subr.bf16.mxu1 %v1673_v37 }
  0x9c   : > { %537 = vmatmul.mubr.bf16.gmra.mrb[8].mxu0 %v1655_v25  ;;  %657 = vmatmul.mubr.bf16.gmra.mrb[8].mxu1 %v1667_v26 }
  0x9d   : > { %546 = vmatprep.mubr.bf16.mxu0 %v1842_v0  ;;  %666 = vmatprep.mubr.bf16.mxu1 %v1842_v0 }
  0x9e   : > { %1500 = vmatpush3.bf16.msra.mxu1 %v1673_v37 }
  0x9f   : > { %1501 = vmatprep.subr.bf16.mxu1 %v1674_v38 }
  0xa2   : > { %1502 = vmatpush3.bf16.msra.mxu1 %v1674_v38 }
  0xa3   : > { %1503 = vmatprep.subr.bf16.mxu1 %v1675_v39 }
  0xa4   : > { %547 = vmatmul.mubr.bf16.gmra.mrb[12].mxu0 %v1656_v27  ;;  %667 = vmatmul.mubr.bf16.gmra.mrb[12].mxu1 %v1668_v28 }
  0xa5   : > { %556 = vmatprep.mubr.bf16.mxu0 %v1842_v0 }
  0xa6   : > { %1504 = vmatpush3.bf16.msra.mxu1 %v1675_v39 }
  0xa7   : > { %1505 = vmatprep.subr.bf16.mxu1 %v1676_v40 }
  0xaa   : > { %1506 = vmatpush3.bf16.msra.mxu1 %v1676_v40 }
  0xac   : > { %557 = vmatmul.mubr.bf16.gmra.mrb[16].mxu0 %v1657_v29 }
  0xad   : > { %566 = vmatprep.mubr.bf16.mxu0 %v1842_v0 }
  0xb4   : > { %567 = vmatmul.mubr.bf16.gmra.mrb[20].mxu0 %v1658_v30 }
  0xb5   : > { %576 = vmatprep.mubr.bf16.mxu0 %v1842_v0 }
  0xbc   : > { %577 = vmatmul.mubr.bf16.gmra.mrb[24].mxu0 %v1659_v31 }
  0xbd   : > { %586 = vmatprep.mubr.bf16.mxu0 %v1842_v0 }
  0xc4   : > { %587 = vmatmul.mubr.bf16.gmra.mrb[28].mxu0 %v1660_v32 }
  0xc5   : > { %596 = vmatprep.mubr.bf16.mxu0 %v1842_v0 }
  0xcc   : > { %597 = vmatmul.mubr.bf16.gmra.mrb[32].mxu0 %v1661_v33 }
  0xcd   : > { %606 = vmatprep.mubr.bf16.mxu0 %v1842_v0 }
  0xd4   : > { %607 = vmatmul.mubr.bf16.gmra.mrb[36].mxu0 %v1662_v34 }
  0xd5   : > { %616 = vmatprep.mubr.bf16.mxu0 %v1842_v0 }
  0xdc   : > { %617 = vmatmul.mubr.bf16.gmra.mrb[40].mxu0 %v1664_v35 }
  0xdd   : > { %626 = vmatprep.mubr.bf16.mxu0 %v1842_v0 }
  0xe4   : > { %627 = vmatmul.mubr.bf16.gmra.mrb[44].mxu0 %v1666_v36 }
 0x15f   : > { %v518_v48 = vpop.f32.mrb[0].mxu0  ;;  %v638_v49 = vpop.f32.mrb[0].mxu1 }
 0x160   : > { %v519_v50 = vadd.f32 %v518_v48, %v2100_v46  ;;  %v520_v51 = vpop.f32.mrb[1].mxu0  ;;  %v639_v52 = vadd.f32 %v638_v49, %v2100_v46  ;;  %v640_v53 = vpop.f32.mrb[1].mxu1 }
 0x161   : > { %v521_v54 = vadd.f32 %v520_v51, %v2102_v47  ;;  %v522_v55 = vpop.f32.mrb[2].mxu0  ;;  %v641_v56 = vadd.f32 %v640_v53, %v2102_v47  ;;  %v642_v57 = vpop.f32.mrb[2].mxu1 }
 0x162   : > { %v677_v58 = vmax.f32 %v519_v50, 0.0  ;;  %v523_v59 = vadd.f32 %v522_v55, %v2100_v46  ;;  %v524_v60 = vpop.f32.mrb[3].mxu0  ;;  %v701_v61 = vmax.f32 %v639_v52, 0.0  ;;  %v643_v62 = vadd.f32 %v642_v57, %v2100_v46  ;;  %v644_v63 = vpop.f32.mrb[3].mxu1 }
 0x163   : > { %v525_v0 = vadd.f32 %v524_v60, %v2102_v47  ;;  %v645_v1 = vadd.f32 %v644_v63, %v2102_v47 }
 0x164   : > { %v709_v2 = vmul.f32 %v677_v58, %v521_v54  ;;  %v678_v3 = vmax.f32 %v523_v59, 0.0  ;;  %v2112_v4 = vmul.f32 %v701_v61, %v641_v56  ;;  %v702_v5 = vmax.f32 %v643_v62, 0.0 }
 0x166   : > { %v710_v6 = vmul.f32 %v678_v3, %v525_v0  ;;  %v2114_v7 = vmul.f32 %v702_v5, %v645_v1 }
 0x167   : > { %v528_v8 = vpop.f32.mrb[4].mxu0  ;;  %v648_v9 = vpop.f32.mrb[4].mxu1 }
 0x168   : > { %v529_v10 = vadd.f32 %v528_v8, %v2100_v46  ;;  %v530_v11 = vpop.f32.mrb[5].mxu0  ;;  %v741_v12 = vpack.c.bf16 %v710_v6, %v709_v2  ;;  %v649_v13 = vadd.f32 %v648_v9, %v2100_v46  ;;  %v650_v14 = vpop.f32.mrb[5].mxu1  ;;  %v753_v15 = vpack.c.bf16 %v2114_v7, %v2112_v4 }
 0x169   : > { %v531_v16 = vadd.f32 %v530_v11, %v2102_v47  ;;  %v532_v17 = vpop.f32.mrb[6].mxu0  ;;  %v651_v18 = vadd.f32 %v650_v14, %v2102_v47  ;;  %v652_v19 = vpop.f32.mrb[6].mxu1 }
 0x16a   : > { %v679_v20 = vmax.f32 %v529_v10, 0.0  ;;  %v533_v21 = vadd.f32 %v532_v17, %v2100_v46  ;;  %v534_v22 = vpop.f32.mrb[7].mxu0  ;;  %1507 = vmatprep.mubr.bf16.mxu1 %v741_v12  ;;  %v703_v23 = vmax.f32 %v649_v13, 0.0  ;;  %v653_v24 = vadd.f32 %v652_v19, %v2100_v46  ;;  %v654_v25 = vpop.f32.mrb[7].mxu1 }
 0x16b   : > { %v535_v26 = vadd.f32 %v534_v22, %v2102_v47  ;;  %v655_v27 = vadd.f32 %v654_v25, %v2102_v47 }
 0x16c   : > { %v711_v28 = vmul.f32 %v679_v20, %v531_v16  ;;  %v680_v29 = vmax.f32 %v533_v21, 0.0  ;;  %v2126_v30 = vmul.f32 %v703_v23, %v651_v18  ;;  %v704_v31 = vmax.f32 %v653_v24, 0.0 }
 0x16e   : > { %v712_v32 = vmul.f32 %v680_v29, %v535_v26  ;;  %v2128_v33 = vmul.f32 %v704_v31, %v655_v27 }
 0x16f   : > { %v538_v34 = vpop.f32.mrb[8].mxu0  ;;  %v658_v35 = vpop.f32.mrb[8].mxu1 }
 0x170   : > { %v742_v36 = vpack.c.bf16 %v712_v32, %v711_v28  ;;  %v539_v37 = vadd.f32 %v538_v34, %v2100_v46  ;;  %v540_v38 = vpop.f32.mrb[9].mxu0  ;;  %v659_v39 = vadd.f32 %v658_v35, %v2100_v46  ;;  %v660_v40 = vpop.f32.mrb[9].mxu1  ;;  %v754_v41 = vpack.c.bf16 %v2128_v33, %v2126_v30 }
 0x171   : > { %v541_v42 = vadd.f32 %v540_v38, %v2102_v47  ;;  %v542_v43 = vpop.f32.mrb[10].mxu0  ;;  %v661_v44 = vadd.f32 %v660_v40, %v2102_v47  ;;  %v662_v45 = vpop.f32.mrb[10].mxu1 }
 0x172   : > { %v681_v48 = vmax.f32 %v539_v37, 0.0  ;;  %v543_v49 = vadd.f32 %v542_v43, %v2100_v46  ;;  %v544_v50 = vpop.f32.mrb[11].mxu0  ;;  %1508 = vmatmul.mubr.bf16.vlgmr.msra.gmra.mrb[16].mxu1 %v742_v36  ;;  %v705_v51 = vmax.f32 %v659_v39, 0.0  ;;  %v663_v52 = vadd.f32 %v662_v45, %v2100_v46  ;;  %v664_v53 = vpop.f32.mrb[11].mxu1 }
 0x173   : > { %v545_v54 = vadd.f32 %v544_v50, %v2102_v47  ;;  %v665_v55 = vadd.f32 %v664_v53, %v2102_v47 }
 0x174   : > { %v713_v56 = vmul.f32 %v681_v48, %v541_v42  ;;  %v682_v57 = vmax.f32 %v543_v49, 0.0  ;;  %v2140_v58 = vmul.f32 %v705_v51, %v661_v44  ;;  %v706_v59 = vmax.f32 %v663_v52, 0.0 }
 0x176   : > { %v714_v60 = vmul.f32 %v682_v57, %v545_v54  ;;  %v2142_v61 = vmul.f32 %v706_v59, %v665_v55 }
 0x177   : > { %v548_v62 = vpop.f32.mrb[12].mxu0  ;;  %v668_v63 = vpop.f32.mrb[12].mxu1 }
 0x178   : > { %v549_v0 = vadd.f32 %v548_v62, %v2100_v46  ;;  %v550_v1 = vpop.f32.mrb[13].mxu0  ;;  %v743_v2 = vpack.c.bf16 %v714_v60, %v713_v56  ;;  %v669_v3 = vadd.f32 %v668_v63, %v2100_v46  ;;  %v670_v5 = vpop.f32.mrb[13].mxu1  ;;  %v755_v6 = vpack.c.bf16 %v2142_v61, %v2140_v58 }
 0x179   : > { %v551_v8 = vadd.f32 %v550_v1, %v2102_v47  ;;  %v552_v9 = vpop.f32.mrb[14].mxu0  ;;  %v671_v10 = vadd.f32 %v670_v5, %v2102_v47  ;;  %v672_v11 = vpop.f32.mrb[14].mxu1 }
 0x17a   : > { %v683_v12 = vmax.f32 %v549_v0, 0.0  ;;  %v553_v13 = vadd.f32 %v552_v9, %v2100_v46  ;;  %v554_v14 = vpop.f32.mrb[15].mxu0  ;;  %1511 = vmatprep.mubr.bf16.mxu1 %v743_v2  ;;  %v707_v16 = vmax.f32 %v669_v3, 0.0  ;;  %v673_v17 = vadd.f32 %v672_v11, %v2100_v46  ;;  %v674_v18 = vpop.f32.mrb[15].mxu1 }
 0x17b   : > { %v555_v19 = vadd.f32 %v554_v14, %v2102_v47  ;;  %v675_v20 = vadd.f32 %v674_v18, %v2102_v47 }
 0x17c   : > { %v715_v21 = vmul.f32 %v683_v12, %v551_v8  ;;  %v684_v22 = vmax.f32 %v553_v13, 0.0  ;;  %v2154_v23 = vmul.f32 %v707_v16, %v671_v10  ;;  %v708_v24 = vmax.f32 %v673_v17, 0.0 }
 0x17e   : > { %v716_v25 = vmul.f32 %v684_v22, %v555_v19  ;;  %v2156_v26 = vmul.f32 %v708_v24, %v675_v20 }
 0x17f   : > { %v558_v27 = vpop.f32.mrb[16].mxu0 }
 0x180   : > { %v559_v28 = vadd.f32 %v558_v27, %v2100_v46  ;;  %v560_v29 = vpop.f32.mrb[17].mxu0  ;;  %v744_v31 = vpack.c.bf16 %v716_v25, %v715_v21  ;;  %v756_v32 = vpack.c.bf16 %v2156_v26, %v2154_v23 }
 0x181   : > { %v561_v34 = vadd.f32 %v560_v29, %v2102_v47  ;;  %v562_v35 = vpop.f32.mrb[18].mxu0 }
 0x182   : > { %v685_v36 = vmax.f32 %v559_v28, 0.0  ;;  %v563_v37 = vadd.f32 %v562_v35, %v2100_v46  ;;  %v564_v38 = vpop.f32.mrb[19].mxu0  ;;  %1512 = vmatmul.mubr.bf16.gmra.mrb[20].mxu1 %v744_v31 }
 0x183   : > { %v565_v39 = vadd.f32 %v564_v38, %v2102_v47 }
 0x184   : > { %v717_v40 = vmul.f32 %v685_v36, %v561_v34  ;;  %v686_v42 = vmax.f32 %v563_v37, 0.0 }
 0x186   : > { %v718_v43 = vmul.f32 %v686_v42, %v565_v39 }
 0x187   : > { %v568_v44 = vpop.f32.mrb[20].mxu0 }
 0x188   : > { %v569_v45 = vadd.f32 %v568_v44, %v2100_v46  ;;  %v570_v48 = vpop.f32.mrb[21].mxu0  ;;  %v745_v49 = vpack.c.bf16 %v718_v43, %v717_v40 }
 0x189   : > { %v571_v50 = vadd.f32 %v570_v48, %v2102_v47  ;;  %v572_v51 = vpop.f32.mrb[22].mxu0 }
 0x18a   : > { %v687_v52 = vmax.f32 %v569_v45, 0.0  ;;  %v573_v53 = vadd.f32 %v572_v51, %v2100_v46  ;;  %v574_v54 = vpop.f32.mrb[23].mxu0  ;;  %1515 = vmatprep.mubr.bf16.mxu1 %v745_v49 }
 0x18b   : > { %v575_v55 = vadd.f32 %v574_v54, %v2102_v47 }
 0x18c   : > { %v719_v56 = vmul.f32 %v687_v52, %v571_v50  ;;  %v688_v57 = vmax.f32 %v573_v53, 0.0 }
 0x18e   : > { %v720_v59 = vmul.f32 %v688_v57, %v575_v55 }
 0x18f   : > { %v578_v60 = vpop.f32.mrb[24].mxu0 }
 0x190   : > { %v579_v62 = vadd.f32 %v578_v60, %v2100_v46  ;;  %v580_v63 = vpop.f32.mrb[25].mxu0  ;;  %v746_v0 = vpack.c.bf16 %v720_v59, %v719_v56 }
 0x191   : > { %v581_v1 = vadd.f32 %v580_v63, %v2102_v47  ;;  %v582_v2 = vpop.f32.mrb[26].mxu0 }
 0x192   : > { %v689_v3 = vmax.f32 %v579_v62, 0.0  ;;  %v583_v5 = vadd.f32 %v582_v2, %v2100_v46  ;;  %v584_v8 = vpop.f32.mrb[27].mxu0  ;;  %1516 = vmatmul.mubr.bf16.gmra.mrb[24].mxu1 %v746_v0 }
 0x193   : > { %v585_v9 = vadd.f32 %v584_v8, %v2102_v47 }
 0x194   : > { %v721_v10 = vmul.f32 %v689_v3, %v581_v1  ;;  %v690_v11 = vmax.f32 %v583_v5, 0.0 }
 0x196   : > { %v722_v12 = vmul.f32 %v690_v11, %v585_v9 }
 0x197   : > { %v588_v13 = vpop.f32.mrb[28].mxu0 }
 0x198   : > { %v589_v14 = vadd.f32 %v588_v13, %v2100_v46  ;;  %v590_v16 = vpop.f32.mrb[29].mxu0  ;;  %v747_v17 = vpack.c.bf16 %v722_v12, %v721_v10 }
 0x199   : > { %v591_v18 = vadd.f32 %v590_v16, %v2102_v47  ;;  %v592_v19 = vpop.f32.mrb[30].mxu0 }
 0x19a   : > { %v691_v20 = vmax.f32 %v589_v14, 0.0  ;;  %v593_v21 = vadd.f32 %v592_v19, %v2100_v46  ;;  %v594_v22 = vpop.f32.mrb[31].mxu0  ;;  %1519 = vmatprep.mubr.bf16.mxu1 %v747_v17 }
 0x19b   : > { %v595_v24 = vadd.f32 %v594_v22, %v2102_v47 }
 0x19c   : > { %v723_v25 = vmul.f32 %v691_v20, %v591_v18  ;;  %v692_v27 = vmax.f32 %v593_v21, 0.0 }
 0x19e   : > { %v724_v28 = vmul.f32 %v692_v27, %v595_v24 }
 0x19f   : > { %v598_v29 = vpop.f32.mrb[32].mxu0 }
 0x1a0   : > { %v599_v31 = vadd.f32 %v598_v29, %v2100_v46  ;;  %v600_v34 = vpop.f32.mrb[33].mxu0  ;;  %v748_v35 = vpack.c.bf16 %v724_v28, %v723_v25 }
 0x1a1   : > { %v601_v36 = vadd.f32 %v600_v34, %v2102_v47  ;;  %v602_v37 = vpop.f32.mrb[34].mxu0 }
 0x1a2   : > { %v693_v38 = vmax.f32 %v599_v31, 0.0  ;;  %v603_v39 = vadd.f32 %v602_v37, %v2100_v46  ;;  %v604_v40 = vpop.f32.mrb[35].mxu0  ;;  %1520 = vmatmul.mubr.bf16.gmra.mrb[28].mxu1 %v748_v35 }
 0x1a3   : > { %v605_v42 = vadd.f32 %v604_v40, %v2102_v47 }
 0x1a4   : > { %v725_v43 = vmul.f32 %v693_v38, %v601_v36  ;;  %v694_v44 = vmax.f32 %v603_v39, 0.0 }
 0x1a6   : > { %v726_v45 = vmul.f32 %v694_v44, %v605_v42 }
 0x1a7   : > { %v608_v48 = vpop.f32.mrb[36].mxu0 }
 0x1a8   : > { %v609_v49 = vadd.f32 %v608_v48, %v2100_v46  ;;  %v610_v50 = vpop.f32.mrb[37].mxu0  ;;  %v749_v51 = vpack.c.bf16 %v726_v45, %v725_v43 }
 0x1a9   : > { %v611_v52 = vadd.f32 %v610_v50, %v2102_v47  ;;  %v612_v53 = vpop.f32.mrb[38].mxu0 }
 0x1aa   : > { %v695_v54 = vmax.f32 %v609_v49, 0.0  ;;  %v613_v55 = vadd.f32 %v612_v53, %v2100_v46  ;;  %v614_v56 = vpop.f32.mrb[39].mxu0  ;;  %1523 = vmatprep.mubr.bf16.mxu1 %v749_v51 }
 0x1ab   : > { %v615_v57 = vadd.f32 %v614_v56, %v2102_v47 }
 0x1ac   : > { %v727_v59 = vmul.f32 %v695_v54, %v611_v52  ;;  %v696_v60 = vmax.f32 %v613_v55, 0.0 }
 0x1ae   : > { %v728_v62 = vmul.f32 %v696_v60, %v615_v57 }
 0x1af   : > { %v618_v63 = vpop.f32.mrb[40].mxu0 }
 0x1b0   : > { %v619_v0 = vadd.f32 %v618_v63, %v2100_v46  ;;  %v620_v1 = vpop.f32.mrb[41].mxu0  ;;  %v750_v2 = vpack.c.bf16 %v728_v62, %v727_v59 }
 0x1b1   : > { %v621_v3 = vadd.f32 %v620_v1, %v2102_v47  ;;  %v622_v5 = vpop.f32.mrb[42].mxu0 }
 0x1b2   : > { %v697_v8 = vmax.f32 %v619_v0, 0.0  ;;  %v623_v9 = vadd.f32 %v622_v5, %v2100_v46  ;;  %v624_v10 = vpop.f32.mrb[43].mxu0  ;;  %1524 = vmatmul.mubr.bf16.gmra.mrb[32].mxu1 %v750_v2 }
 0x1b3   : > { %v625_v11 = vadd.f32 %v624_v10, %v2102_v47 }
 0x1b4   : > { %v729_v12 = vmul.f32 %v697_v8, %v621_v3  ;;  %v698_v13 = vmax.f32 %v623_v9, 0.0 }
 0x1b6   : > { %v730_v14 = vmul.f32 %v698_v13, %v625_v11 }
 0x1b7   : > { %v628_v16 = vpop.f32.mrb[44].mxu0 }
 0x1b8   : > { %v629_v17 = vadd.f32 %v628_v16, %v2100_v46  ;;  %v630_v18 = vpop.f32.mrb[45].mxu0  ;;  %v751_v19 = vpack.c.bf16 %v730_v14, %v729_v12 }
 0x1b9   : > { %v631_v20 = vadd.f32 %v630_v18, %v2102_v47  ;;  %v632_v21 = vpop.f32.mrb[46].mxu0 }
 0x1ba   : > { %v699_v22 = vmax.f32 %v629_v17, 0.0  ;;  %v633_v24 = vadd.f32 %v632_v21, %v2100_v46  ;;  %v634_v25 = vpop.f32.mrb[47].mxu0  ;;  %1527 = vmatprep.mubr.bf16.mxu1 %v751_v19 }
 0x1bb   : > { %v635_v27 = vadd.f32 %v634_v25, %v2102_v47 }
 0x1bc   : > { %v731_v28 = vmul.f32 %v699_v22, %v631_v20  ;;  %v700_v29 = vmax.f32 %v633_v24, 0.0 }
 0x1be   : > { %v732_v31 = vmul.f32 %v700_v29, %v635_v27 }
 0x1c0   : > { %v752_v34 = vpack.c.bf16 %v732_v31, %v731_v28 }
 0x1c2   : > { %1528 = vmatmul.mubr.bf16.gmra.mrb[36].mxu1 %v752_v34 }
 0x1c3   : > { %1531 = vmatprep.mubr.bf16.mxu1 %v753_v15 }
 0x1ca   : > { %1532 = vmatmul.mubr.bf16.gmra.mrb[40].mxu1 %v754_v41 }
 0x1cb   : > { %1535 = vmatprep.mubr.bf16.mxu1 %v755_v6 }
 0x1d2   : > { %1536 = vmatmul.mubr.bf16.gmra.mrb[44].mxu1 %v756_v32 }
 0x245   : > { %v1509_v46 = vpop.f32.mrb[16].mxu1 }
 0x246   : > { %v855_v47 = vpop.f32.mrb[17].mxu1 }
 0x247   : > { %v1510_v35 = vpop.f32.mrb[18].mxu1 }
 0x248   : > { %v1380_v36 = vpack.c.bf16 %v1510_v35, %v1509_v46  ;;  %v858_v37 = vpop.f32.mrb[19].mxu1 }
 0x249   : > { %v1375_v38 = vpack.c.bf16 %v858_v37, %v855_v47 }
 0x24a   : > { %1452 = vst [vmem:[%s2206_s7 + $0x8] sm:$0xff] %v1380_v36  }
 0x24b   : > { %1376 = vst [vmem:[%s2206_s7] sm:$0xff] %v1375_v38  }
 0x255   : > { %v1513_v4 = vpop.f32.mrb[20].mxu1 }
 0x256   : > { %v871_v7 = vpop.f32.mrb[21].mxu1 }
 0x257   : > { %v1514_v15 = vpop.f32.mrb[22].mxu1 }
 0x258   : > { %v1390_v30 = vpack.c.bf16 %v1514_v15, %v1513_v4  ;;  %v874_v33 = vpop.f32.mrb[23].mxu1 }
 0x259   : > { %v1385_v41 = vpack.c.bf16 %v874_v33, %v871_v7 }
 0x25a   : > { %1454 = vst [vmem:[%s2206_s7 + $0x18] sm:$0xff] %v1390_v30  }
 0x25b   : > { %1453 = vst [vmem:[%s2206_s7 + $0x10] sm:$0xff] %v1385_v41  }
 0x265   : > { %v1517_v58 = vpop.f32.mrb[24].mxu1 }
 0x266   : > { %v887_v61 = vpop.f32.mrb[25].mxu1 }
 0x267   : > { %v1518_v6 = vpop.f32.mrb[26].mxu1 }
 0x268   : > { %v1400_v23 = vpack.c.bf16 %v1518_v6, %v1517_v58  ;;  %v890_v26 = vpop.f32.mrb[27].mxu1 }
 0x269   : > { %v1395_v32 = vpack.c.bf16 %v890_v26, %v887_v61 }
 0x26a   : > { %1456 = vst [vmem:[%s2206_s7 + $0x28] sm:$0xff] %v1400_v23  }
 0x26b   : > { %1455 = vst [vmem:[%s2206_s7 + $0x20] sm:$0xff] %v1395_v32  }
 0x275   : > { %v1521_v39 = vpop.f32.mrb[28].mxu1 }
 0x276   : > { %v903_v40 = vpop.f32.mrb[29].mxu1 }
 0x277   : > { %v1522_v42 = vpop.f32.mrb[30].mxu1 }
 0x278   : > { %v1410_v43 = vpack.c.bf16 %v1522_v42, %v1521_v39  ;;  %v906_v44 = vpop.f32.mrb[31].mxu1 }
 0x279   : > { %v1405_v45 = vpack.c.bf16 %v906_v44, %v903_v40 }
 0x27a   : > { %1458 = vst [vmem:[%s2206_s7 + $0x38] sm:$0xff] %v1410_v43  }
 0x27b   : > { %1457 = vst [vmem:[%s2206_s7 + $0x30] sm:$0xff] %v1405_v45  }
 0x285   : > { %v1525_v48 = vpop.f32.mrb[32].mxu1 }
 0x286   : > { %v919_v49 = vpop.f32.mrb[33].mxu1 }
 0x287   : > { %v1526_v50 = vpop.f32.mrb[34].mxu1 }
 0x288   : > { %v1420_v51 = vpack.c.bf16 %v1526_v50, %v1525_v48  ;;  %v922_v52 = vpop.f32.mrb[35].mxu1 }
 0x289   : > { %v1415_v53 = vpack.c.bf16 %v922_v52, %v919_v49 }
 0x28a   : > { %1460 = vst [vmem:[%s2206_s7 + $0x48] sm:$0xff] %v1420_v51  }
 0x28b   : > { %1459 = vst [vmem:[%s2206_s7 + $0x40] sm:$0xff] %v1415_v53  }
 0x295   : > { %v1529_v54 = vpop.f32.mrb[36].mxu1 }
 0x296   : > { %v935_v55 = vpop.f32.mrb[37].mxu1 }
 0x297   : > { %v1530_v56 = vpop.f32.mrb[38].mxu1 }
 0x298   : > { %v1430_v57 = vpack.c.bf16 %v1530_v56, %v1529_v54  ;;  %v938_v59 = vpop.f32.mrb[39].mxu1 }
 0x299   : > { %v1425_v60 = vpack.c.bf16 %v938_v59, %v935_v55 }
 0x29a   : > { %1462 = vst [vmem:[%s2206_s7 + $0x58] sm:$0xff] %v1430_v57  }
 0x29b   : > { %1461 = vst [vmem:[%s2206_s7 + $0x50] sm:$0xff] %v1425_v60  }
 0x29d   : > { %v1533_v62 = vpop.f32.mrb[40].mxu1 }
 0x29e   : > { %v951_v63 = vpop.f32.mrb[41].mxu1 }
 0x29f   : > { %v1534_v0 = vpop.f32.mrb[42].mxu1 }
 0x2a0   : > { %v1440_v1 = vpack.c.bf16 %v1534_v0, %v1533_v62  ;;  %v954_v2 = vpop.f32.mrb[43].mxu1 }
 0x2a1   : > { %v1435_v3 = vpack.c.bf16 %v954_v2, %v951_v63 }
 0x2a2   : > { %1464 = vst [vmem:[%s2206_s7 + $0x68] sm:$0xff] %v1440_v1  }
 0x2a3   : > { %1463 = vst [vmem:[%s2206_s7 + $0x60] sm:$0xff] %v1435_v3  }
 0x2a5   : > { %v1537_v5 = vpop.f32.mrb[44].mxu1 }
 0x2a6   : > { %v967_v8 = vpop.f32.mrb[45].mxu1 }
 0x2a7   : > { %v1538_v9 = vpop.f32.mrb[46].mxu1 }
 0x2a8   : > { %v1450_v10 = vpack.c.bf16 %v1538_v9, %v1537_v5  ;;  %v970_v11 = vpop.f32.mrb[47].mxu1 }
 0x2a9   : > { %v1445_v12 = vpack.c.bf16 %v970_v11, %v967_v8 }
 0x2aa   : > { %1466 = vst [vmem:[%s2206_s7 + $0x78] sm:$0xff] %v1450_v10  }
 0x2ab   : > { %1465 = vst [vmem:[%s2206_s7 + $0x70] sm:$0xff] %v1445_v12  }
 0x2ac   : > { %1776 = shalt.err (!%p1773_p2)
}
 0x2ad   : > { %s1777_s12 = scalar_lea.hbm %s2227_s28, 2048  ;;  %s1781_s25 = scalar_lea.hbm %s2279_s4, 4096 }
 0x2ae   : > { %p1778_p13 = scmp.ne.s32.totalorder %s2227_s28, %s1777_s12  ;;  %p1782_p4 = scmp.lt.u32.totalorder %s2227_s28, %s2279_s4 }
 0x2af   : > { %p1783_p7 = scmp.lt.u32.totalorder %s1781_s25, %s1777_s12  ;;  %p1785_p11 = scmp.lt.u32.totalorder %s1777_s12, %s2227_s28 }
 0x2b0   : > { %p1779_p6 = pnand %p1778_p13, %p2293_p0 }
 0x2b1   : > { %p1784_p8 = por %p1783_p7, %p1782_p4 }
 0x2b2   : > { %p1780_p10 = pneg %p1779_p6 }
 0x2b3   : > { %p1786_p1 = por %p1785_p11, %p1784_p8 }
 0x2b5   : > { %p1787_p3 = pnand %p1786_p1, %p1780_p10 }
 0x2b7   : > { %1790 = shalt.err (!%p1787_p3)
}
 0x2b8   : > { %s1844_s7 = smov 64   ;;  %s1845_s8 = smov 4  }
 0x2b9   : > { %1565 = dma.vmem_to_hbm [thread:$0]  (%p2293_p0), %s2229_s30, 2048, %s2227_s28, %s1143_s27, %s1844_s7, %s1844_s7, %s1845_s8  }
 0x2ba PF: > { %s1171_s6 = sand.u32 1, %s1821_s15   ;;  %p2294_p5 = scmp.ne.s32.totalorder %s2284_s22, 0 }
 0x2bb   : > { %p2295_p9 = scmp.ge.s32.totalorder %s1833_s18, 2  ;;  %s1172_s9 = scalar_lea.sflag [#allocation4], %s1171_s6 }
 0x2bd   : > { %p1579_p12 = pnand %p2295_p9, %p2294_p5 }
 0x2bf   : > { %1816 = dma.done.wait (!%p1579_p12), %s1172_s9, 2048  }
 0x2c0   : > { %1818 = vsyncadd (!%p1579_p12), %s1172_s9, 4294965248  ;;  %p18_p2 = scmp.ge.s32.totalorder %s1984_s11, 4   ;;  %s2296_s15 = smov %s1825_s16 }
 0x2c1   : > { %s2297_s16 = smov %s1829_s17  ;;  %s2298_s17 = smov %s1993_s14 }
 0x2c2   : > { %s2299_s18 = smov %s1984_s11  ;;  %20 = sbr.rel (!%p18_p2) target bundleno = 6 (0x6), region = 89 }
 0x2c9   :  { %1177 = vsyncpa [#allocation3], 1 }
 0x2ca   :  { %1179 = vsyncpa [#allocation3 + $0x1], 1 }
 0x2cb   :  { %1180 = vsyncpa [#allocation6], 1 }
 0x2cc   :  { %1181 = vsyncpa [#allocation4], 1 }
 0x2cd   :  { %1183 = vsyncpa [#allocation4 + $0x1], 1 }

</bundles_post_ra>
